<compile_context>
chip_gen: v7x
topology: tpu7x:2x2x1
jax: 0.10.0
libtpu: 0.0.40
codegen_flags: <defaults>
</compile_context>

<pallas_src>
import functools
import math

import jax
import jax.numpy as jnp
from jax import lax
from jax.experimental import pallas as pl
from jax.experimental.pallas import tpu as pltpu


LN_EPS = 1e-5                    # PyTorch nn.LayerNorm default
_SQRT_HALF = 0.7071067811865476


def _round_up(x, m):
    return ((x + m - 1) // m) * m


def _cdiv(a, b):
    return -(-a // b)


def _gelu_exact(x):
    # PyTorch nn.GELU() default (exact erf formulation).
    return 0.5 * x * (1.0 + lax.erf(x * _SQRT_HALF))


def _gelu(x, approximate):
    if approximate:
        # tanh approximation -> transcendental lands on the EUP slot.
        return jax.nn.gelu(x, approximate=True)
    return _gelu_exact(x)


def _layernorm(h, gamma, beta, lane_mask, n_features):
    """Two-pass (subtract-mean) LayerNorm over the last axis.

    Padded lanes of `h` are exactly zero on entry, so the sum (divided by the
    *actual* feature count) gives the correct mean; `lane_mask` zeroes the
    padded lanes of the centered value so they cannot pollute the variance.
    Padded-lane outputs stay 0 because gamma/beta are zero there.
    """
    inv_n = 1.0 / float(n_features)
    mean = jnp.sum(h, axis=-1, keepdims=True) * inv_n
    centered = h - mean
    cm = centered if lane_mask is None else centered * lane_mask
    var = jnp.sum(cm * cm, axis=-1, keepdims=True) * inv_n
    return centered * lax.rsqrt(var + LN_EPS) * gamma + beta


def _jepa_kernel(x_ref, w1_ref, w2_ref, w3_ref, vec_ref, o_ref,
                 *, n_features, hp, dop, approx_gelu, use_mask):
    # Packed parameter slab (f32): rows = b1, g1, be1, b2, g2, be2, b3, lane-mask.
    slab = vec_ref[...]
    b1, g1, be1 = slab[0:1, :hp], slab[1:2, :hp], slab[2:3, :hp]
    b2, g2, be2 = slab[3:4, :hp], slab[4:5, :hp], slab[5:6, :hp]
    b3 = slab[6:7, :dop]
    lane_mask = slab[7:8, :hp] if use_mask else None

    x = x_ref[...].astype(jnp.bfloat16)              # bf16 MXU operands, f32 acc

    # Layer 1: Linear -> LayerNorm -> GELU
    h = jnp.dot(x, w1_ref[...], preferred_element_type=jnp.float32) + b1
    h = _gelu(_layernorm(h, g1, be1, lane_mask, n_features), approx_gelu)

    # Layer 2: Linear -> LayerNorm -> GELU
    h = jnp.dot(h.astype(jnp.bfloat16), w2_ref[...],
                preferred_element_type=jnp.float32) + b2
    h = _gelu(_layernorm(h, g2, be2, lane_mask, n_features), approx_gelu)

    # Output projection
    out = jnp.dot(h.astype(jnp.bfloat16), w3_ref[...],
                  preferred_element_type=jnp.float32) + b3
    o_ref[...] = out.astype(o_ref.dtype)


def _device_profile():
    try:
        kind = jax.devices()[0].device_kind.lower()
    except Exception:
        kind = ""
    is_v5 = "v5" in kind
    is_v7 = "v7" in kind
    try:
        vmem_cap = int(pltpu.get_tpu_info().vmem_capacity_bytes)
    except Exception:
        vmem_cap = (64 << 20) if is_v7 else (128 << 20)
    return vmem_cap, is_v5, is_v7


def _vmem_estimate(tile_m, d_in, hp, dop, pmax, weight_bytes, weight_bufs):
    f32 = 4
    io = 2 * tile_m * d_in * f32 + 2 * tile_m * dop * f32   # double-buffered x / out
    slab = 2 * 8 * pmax * f32
    temps = 6 * tile_m * max(hp, dop) * f32                 # live f32 activation temps
    return weight_bufs * weight_bytes + io + slab + temps + (4 << 20)


def _plan_tile(B, d_in, hp, dop, pmax, weight_bytes, vmem_cap, is_v7):
    cap = max(min(vmem_cap - (8 << 20), 100 << 20), 16 << 20)
    if B <= 128:
        tile = _round_up(B, 8)
    elif B <= 256:
        if is_v7 and weight_bytes <= (8 << 20):
            tile = _round_up(_cdiv(B, 2), 8)     # grid_m >= 2: feed both v7x TCs
        else:
            tile = _round_up(B, 8)
    else:
        tile = 256 if is_v7 else 512             # bigger tiles on 128 MiB VMEM parts
    while tile > 8 and _vmem_estimate(tile, d_in, hp, dop, pmax,
                                      weight_bytes, 1) > cap:
        tile = max(8, _round_up(tile // 2, 8))
    # TODO(synk): if the single-buffered weight set alone exceeds `cap`, block
    # the Hp contraction dim with an extra "arbitrary" grid axis + f32
    # accumulator instead of relying on Mosaic spilling.
    return tile, _cdiv(B, tile), cap


def make_jepa_predictor(params, *, approximate_gelu=None):
    """Pad/cast the parameters ONCE and return a fused forward function."""
    w1, w2, w3 = params["w1"], params["w2"], params["w3"]
    D_in, H = w1.shape
    D_out = w3.shape[1]
    Hp = _round_up(H, 128)
    Dop = _round_up(D_out, 128)
    Pmax = max(Hp, Dop)

    vmem_cap, is_v5, is_v7 = _device_profile()
    if approximate_gelu is None:
        approximate_gelu = is_v5         # tanh GELU -> EUP slot on v5e (VALU relief)

    # ---- One-time parameter preparation (hoisted out of the per-call path) ----
    def pad_w(w, rows, cols):
        return jnp.zeros((rows, cols), jnp.bfloat16).at[
            :w.shape[0], :w.shape[1]].set(jnp.asarray(w, jnp.bfloat16))

    w1p = pad_w(w1, D_in, Hp)            # contraction rows stay un-padded
    w2p = pad_w(w2, Hp, Hp)
    w3p = pad_w(w3, Hp, Dop)

    def pad_v(v):
        v = jnp.asarray(v, jnp.float32).reshape(-1)
        return jnp.zeros((Pmax,), jnp.float32).at[:v.shape[0]].set(v)

    lane_mask = (jnp.arange(Pmax) < H).astype(jnp.float32)
    slab = jnp.stack(
        [pad_v(params["b1"]), pad_v(params["g1"]), pad_v(params["be1"]),
         pad_v(params["b2"]), pad_v(params["g2"]), pad_v(params["be2"]),
         pad_v(params["b3"]), lane_mask], axis=0)
    w1p, w2p, w3p, slab = jax.block_until_ready((w1p, w2p, w3p, slab))

    weight_bytes = 2 * (D_in * Hp + Hp * Hp + Hp * Dop)      # bf16, single copy
    use_mask = (Hp != H)

    def build(B, tile_m, grid_m, cap, single_buffer_weights):
        kernel = functools.partial(
            _jepa_kernel, n_features=H, hp=Hp, dop=Dop,
            approx_gelu=approximate_gelu, use_mask=use_mask)
        if single_buffer_weights:
            def wspec(r, c):
                # Grid-invariant block: a second prefetch buffer is pure waste.
                return pl.BlockSpec((r, c), lambda i: (0, 0),
                                    pipeline_mode=pl.Buffered(buffer_count=1))
        else:
            def wspec(r, c):
                return pl.BlockSpec((r, c), lambda i: (0, 0))
        weight_bufs = 1 if single_buffer_weights else 2
        est = _vmem_estimate(tile_m, D_in, Hp, Dop, Pmax, weight_bytes, weight_bufs)
        vmem_limit = int(min(max(est, 32 << 20), cap))
        return pl.pallas_call(
            kernel,
            out_shape=jax.ShapeDtypeStruct((B, Dop), jnp.float32),
            grid_spec=pltpu.PrefetchScalarGridSpec(
                num_scalar_prefetch=0,
                grid=(grid_m,),
                in_specs=[
                    pl.BlockSpec((tile_m, D_in), lambda i: (i, 0)),   # x tile (ragged)
                    wspec(D_in, Hp),                                  # w1
                    wspec(Hp, Hp),                                    # w2
                    wspec(Hp, Dop),                                   # w3
                    wspec(8, Pmax),                                   # bias/LN/mask slab
                ],
                out_specs=pl.BlockSpec((tile_m, Dop), lambda i: (i, 0)),
            ),
            compiler_params=pltpu.CompilerParams(
                dimension_semantics=("parallel",),
                vmem_limit_bytes=vmem_limit,
            ),
        )

    cache = {}
    opts = {"single_buffer_weights": True}

    def run(x2, single_buffer_weights):
        B = x2.shape[0]
        key = (B, single_buffer_weights)
        fn = cache.get(key)
        if fn is None:
            tile_m, grid_m, cap = _plan_tile(B, D_in, Hp, Dop, Pmax,
                                             weight_bytes, vmem_cap, is_v7)
            fn = build(B, tile_m, grid_m, cap, single_buffer_weights)
            cache[key] = fn
        return fn(x2, w1p, w2p, w3p, slab)

    def predict(x):
        if x.shape[-1] != D_in:
            raise ValueError(f"expected last dim {D_in}, got {x.shape[-1]}")
        lead = x.shape[:-1]
        x2 = x.reshape(-1, D_in)
        if opts["single_buffer_weights"]:
            try:
                out = run(x2, True)
            except Exception:
                # Compatibility fallback: this jax/libtpu rejects
                # pipeline_mode=pl.Buffered(1); use default double buffering.
                opts["single_buffer_weights"] = False
                out = run(x2, False)
        else:
            out = run(x2, False)
        out = out if Dop == D_out else out[:, :D_out]
        return out.reshape(*lead, D_out).astype(x.dtype)

    predict.approximate_gelu = approximate_gelu
    return predict


def init_jepa_predictor_params(key, input_dim, hidden_dim, output_dim):
    """Deterministic synthetic init matching the module's parameter shapes."""
    actual_hidden_dim = max(hidden_dim, input_dim // 2, output_dim // 4, 64)
    H = actual_hidden_dim

    def linear_init(k, fan_in, fan_out):
        kw, kb = jax.random.split(k)
        bound = math.sqrt(1.0 / fan_in)
        w = jax.random.uniform(kw, (fan_in, fan_out), jnp.float32, -bound, bound)
        b = jax.random.uniform(kb, (fan_out,), jnp.float32, -bound, bound)
        return w, b

    k1, k2, k3 = jax.random.split(key, 3)
    w1, b1 = linear_init(k1, input_dim, H)
    w2, b2 = linear_init(k2, H, H)
    w3, b3 = linear_init(k3, H, output_dim)

    params = dict(
        w1=w1, b1=b1,
        g1=jnp.ones((H,), jnp.float32), be1=jnp.zeros((H,), jnp.float32),
        w2=w2, b2=b2,
        g2=jnp.ones((H,), jnp.float32), be2=jnp.zeros((H,), jnp.float32),
        w3=w3, b3=b3,
    )
    return params, H


def jepa_predictor_ref(x, p, *, matmul_dtype=jnp.float32, approximate_gelu=False):
    """Pure-JAX reference of the PyTorch forward.

    matmul_dtype=jnp.bfloat16 mirrors the kernel's MXU operand precision for a
    tight check; jnp.float32 matches PyTorch f32 semantics (the kernel's bf16
    operand quantization is an intentional ~5e-2 precision contract).
    """
    def ln(h, g, b):
        m = jnp.mean(h, axis=-1, keepdims=True)
        v = jnp.mean((h - m) ** 2, axis=-1, keepdims=True)
        return (h - m) / jnp.sqrt(v + LN_EPS) * g + b

    def mm(a, w):
        return jnp.dot(a.astype(matmul_dtype), w.astype(matmul_dtype),
                       preferred_element_type=jnp.float32)

    def act(h):
        return jax.nn.gelu(h, approximate=True) if approximate_gelu else _gelu_exact(h)

    h = mm(x, p["w1"]) + p["b1"]
    h = act(ln(h, p["g1"], p["be1"]))
    h = mm(h, p["w2"]) + p["b2"]
    h = act(ln(h, p["g2"], p["be2"]))
    return mm(h, p["w3"]) + p["b3"]


if __name__ == "__main__":
    # Small shapes consistent with the module: context patch embeddings ->
    # predicted target embeddings. actual_hidden_dim = max(32,16,16,64) = 64.
    B = 16
    input_dim = 32
    hidden_dim = 32
    output_dim = 64

    key = jax.random.PRNGKey(0)
    kx, kp = jax.random.split(key)
    x = jax.random.normal(kx, (B, input_dim), jnp.float32)
    params, H = init_jepa_predictor_params(kp, input_dim, hidden_dim, output_dim)

    predict = make_jepa_predictor(params)
    out = jax.block_until_ready(predict(x))
    assert out.shape == (B, output_dim)

    approx = predict.approximate_gelu
    # Tight check vs. a reference mirroring the kernel's bf16 MXU operands
    # (f32 accumulation); looser check vs. full-f32 semantics (difference is
    # only bf16 operand quantization).
    ref_matched = jepa_predictor_ref(x, params, matmul_dtype=jnp.bfloat16,
                                     approximate_gelu=approx)
    ref_f32 = jepa_predictor_ref(x, params, matmul_dtype=jnp.float32,
                                 approximate_gelu=approx)
    assert jnp.allclose(out, ref_matched, atol=2e-3, rtol=2e-3), (
        "mismatch vs matched-precision reference: "
        f"max abs diff {float(jnp.max(jnp.abs(out - ref_matched)))}")
    assert jnp.allclose(out, ref_f32, atol=5e-2, rtol=5e-2), (
        "mismatch vs f32 reference: "
        f"max abs diff {float(jnp.max(jnp.abs(out - ref_f32)))}")

    # Second call reuses the cached pallas_call and pre-padded weights.
    out2 = jax.block_until_ready(predict(x))
    assert jnp.allclose(out, out2)

    print("KERNEL_OK")
</pallas_src>

<mosaic_0001>
module attributes {stable_mosaic.version = 11 : i64} {
  func.func @_jepa_kernel(%arg0: i32, %arg1: memref<16x32xf32, #tpu.memory_space<vmem>>, %arg2: memref<32x128xbf16, #tpu.memory_space<vmem>>, %arg3: memref<128x128xbf16, #tpu.memory_space<vmem>>, %arg4: memref<128x128xbf16, #tpu.memory_space<vmem>>, %arg5: memref<8x128xf32, #tpu.memory_space<vmem>>, %arg6: memref<16x128xf32, #tpu.memory_space<vmem>>) attributes {dimension_semantics = [#tpu.dimension_semantics<parallel>], iteration_bounds = array<i64: 1>, scalar_prefetch = 0 : i64, scratch_operands = 0 : i64, tpu.core_type = #tpu.core_type<tc>, window_params = [{transform_indices = @transform_0, window_bounds = array<i64: 16, 32>}, {pipeline_mode = #tpu.pipeline_mode<synchronous>, transform_indices = @transform_1, window_bounds = array<i64: 32, 128>}, {pipeline_mode = #tpu.pipeline_mode<synchronous>, transform_indices = @transform_2, window_bounds = array<i64: 128, 128>}, {pipeline_mode = #tpu.pipeline_mode<synchronous>, transform_indices = @transform_3, window_bounds = array<i64: 128, 128>}, {pipeline_mode = #tpu.pipeline_mode<synchronous>, transform_indices = @transform_4, window_bounds = array<i64: 8, 128>}, {transform_indices = @transform_5, window_bounds = array<i64: 16, 128>}]} {
    %c0 = arith.constant 0 : index
    %c0_0 = arith.constant 0 : index
    %0 = vector.load %arg5[%c0, %c0_0] : memref<8x128xf32, #tpu.memory_space<vmem>>, vector<8x128xf32>
    %1 = vector.extract_strided_slice %0 {offsets = [0, 0], sizes = [1, 128], strides = [1, 1]} : vector<8x128xf32> to vector<1x128xf32>
    %2 = vector.extract_strided_slice %0 {offsets = [1, 0], sizes = [1, 128], strides = [1, 1]} : vector<8x128xf32> to vector<1x128xf32>
    %3 = vector.extract_strided_slice %0 {offsets = [2, 0], sizes = [1, 128], strides = [1, 1]} : vector<8x128xf32> to vector<1x128xf32>
    %4 = vector.extract_strided_slice %0 {offsets = [3, 0], sizes = [1, 128], strides = [1, 1]} : vector<8x128xf32> to vector<1x128xf32>
    %5 = vector.extract_strided_slice %0 {offsets = [4, 0], sizes = [1, 128], strides = [1, 1]} : vector<8x128xf32> to vector<1x128xf32>
    %6 = vector.extract_strided_slice %0 {offsets = [5, 0], sizes = [1, 128], strides = [1, 1]} : vector<8x128xf32> to vector<1x128xf32>
    %7 = vector.extract_strided_slice %0 {offsets = [6, 0], sizes = [1, 128], strides = [1, 1]} : vector<8x128xf32> to vector<1x128xf32>
    %8 = vector.extract_strided_slice %0 {offsets = [7, 0], sizes = [1, 128], strides = [1, 1]} : vector<8x128xf32> to vector<1x128xf32>
    %c0_1 = arith.constant 0 : index
    %c0_2 = arith.constant 0 : index
    %9 = vector.load %arg1[%c0_1, %c0_2] : memref<16x32xf32, #tpu.memory_space<vmem>>, vector<16x32xf32>
    %10 = arith.truncf %9 : vector<16x32xf32> to vector<16x32xbf16>
    %c0_3 = arith.constant 0 : index
    %c0_4 = arith.constant 0 : index
    %11 = vector.load %arg2[%c0_3, %c0_4] : memref<32x128xbf16, #tpu.memory_space<vmem>>, vector<32x128xbf16>
    %cst = arith.constant dense<0.000000e+00> : vector<16x128xf32>
    %12 = tpu.matmul %10, %11, %cst {dimension_numbers = #tpu.dot_dimension_numbers<[1], [0], [0], [1], [0, 0, 1, 1], [], []>} : vector<16x32xbf16>, vector<32x128xbf16>, vector<16x128xf32> -> vector<16x128xf32>
    %13 = vector.broadcast %1 : vector<1x128xf32> to vector<16x128xf32>
    %14 = arith.addf %12, %13 : vector<16x128xf32>
    %cst_5 = arith.constant dense<0.000000e+00> : vector<16xf32>
    %15 = vector.multi_reduction <add>, %14, %cst_5 [1] : vector<16x128xf32> to vector<16xf32>
    %16 = vector.shape_cast %15 : vector<16xf32> to vector<16x1xf32>
    %cst_6 = arith.constant 1.562500e-02 : f32
    %17 = vector.broadcast %cst_6 : f32 to vector<16x1xf32>
    %18 = arith.mulf %16, %17 : vector<16x1xf32>
    %19 = vector.broadcast %18 : vector<16x1xf32> to vector<16x128xf32>
    %20 = arith.subf %14, %19 : vector<16x128xf32>
    %21 = vector.broadcast %8 : vector<1x128xf32> to vector<16x128xf32>
    %22 = arith.mulf %20, %21 : vector<16x128xf32>
    %23 = arith.mulf %22, %22 : vector<16x128xf32>
    %cst_7 = arith.constant dense<0.000000e+00> : vector<16xf32>
    %24 = vector.multi_reduction <add>, %23, %cst_7 [1] : vector<16x128xf32> to vector<16xf32>
    %25 = vector.shape_cast %24 : vector<16xf32> to vector<16x1xf32>
    %cst_8 = arith.constant 1.562500e-02 : f32
    %26 = vector.broadcast %cst_8 : f32 to vector<16x1xf32>
    %27 = arith.mulf %25, %26 : vector<16x1xf32>
    %cst_9 = arith.constant 9.99999974E-6 : f32
    %28 = vector.broadcast %cst_9 : f32 to vector<16x1xf32>
    %29 = arith.addf %27, %28 : vector<16x1xf32>
    %30 = math.rsqrt %29 : vector<16x1xf32>
    %31 = vector.broadcast %30 : vector<16x1xf32> to vector<16x128xf32>
    %32 = arith.mulf %20, %31 : vector<16x128xf32>
    %33 = vector.broadcast %2 : vector<1x128xf32> to vector<16x128xf32>
    %34 = arith.mulf %32, %33 : vector<16x128xf32>
    %35 = vector.broadcast %3 : vector<1x128xf32> to vector<16x128xf32>
    %36 = arith.addf %34, %35 : vector<16x128xf32>
    %cst_10 = arith.constant 5.000000e-01 : f32
    %37 = vector.broadcast %cst_10 : f32 to vector<16x128xf32>
    %38 = arith.mulf %37, %36 : vector<16x128xf32>
    %cst_11 = arith.constant 0.707106769 : f32
    %39 = vector.broadcast %cst_11 : f32 to vector<16x128xf32>
    %40 = arith.mulf %36, %39 : vector<16x128xf32>
    %41 = math.erf %40 : vector<16x128xf32>
    %cst_12 = arith.constant 1.000000e+00 : f32
    %42 = vector.broadcast %cst_12 : f32 to vector<16x128xf32>
    %43 = arith.addf %42, %41 : vector<16x128xf32>
    %44 = arith.mulf %38, %43 : vector<16x128xf32>
    %45 = arith.truncf %44 : vector<16x128xf32> to vector<16x128xbf16>
    %c0_13 = arith.constant 0 : index
    %c0_14 = arith.constant 0 : index
    %46 = vector.load %arg3[%c0_13, %c0_14] : memref<128x128xbf16, #tpu.memory_space<vmem>>, vector<128x128xbf16>
    %cst_15 = arith.constant dense<0.000000e+00> : vector<16x128xf32>
    %47 = tpu.matmul %45, %46, %cst_15 {dimension_numbers = #tpu.dot_dimension_numbers<[1], [0], [0], [1], [0, 0, 1, 1], [], []>} : vector<16x128xbf16>, vector<128x128xbf16>, vector<16x128xf32> -> vector<16x128xf32>
    %48 = vector.broadcast %4 : vector<1x128xf32> to vector<16x128xf32>
    %49 = arith.addf %47, %48 : vector<16x128xf32>
    %cst_16 = arith.constant dense<0.000000e+00> : vector<16xf32>
    %50 = vector.multi_reduction <add>, %49, %cst_16 [1] : vector<16x128xf32> to vector<16xf32>
    %51 = vector.shape_cast %50 : vector<16xf32> to vector<16x1xf32>
    %cst_17 = arith.constant 1.562500e-02 : f32
    %52 = vector.broadcast %cst_17 : f32 to vector<16x1xf32>
    %53 = arith.mulf %51, %52 : vector<16x1xf32>
    %54 = vector.broadcast %53 : vector<16x1xf32> to vector<16x128xf32>
    %55 = arith.subf %49, %54 : vector<16x128xf32>
    %56 = vector.broadcast %8 : vector<1x128xf32> to vector<16x128xf32>
    %57 = arith.mulf %55, %56 : vector<16x128xf32>
    %58 = arith.mulf %57, %57 : vector<16x128xf32>
    %cst_18 = arith.constant dense<0.000000e+00> : vector<16xf32>
    %59 = vector.multi_reduction <add>, %58, %cst_18 [1] : vector<16x128xf32> to vector<16xf32>
    %60 = vector.shape_cast %59 : vector<16xf32> to vector<16x1xf32>
    %cst_19 = arith.constant 1.562500e-02 : f32
    %61 = vector.broadcast %cst_19 : f32 to vector<16x1xf32>
    %62 = arith.mulf %60, %61 : vector<16x1xf32>
    %cst_20 = arith.constant 9.99999974E-6 : f32
    %63 = vector.broadcast %cst_20 : f32 to vector<16x1xf32>
    %64 = arith.addf %62, %63 : vector<16x1xf32>
    %65 = math.rsqrt %64 : vector<16x1xf32>
    %66 = vector.broadcast %65 : vector<16x1xf32> to vector<16x128xf32>
    %67 = arith.mulf %55, %66 : vector<16x128xf32>
    %68 = vector.broadcast %5 : vector<1x128xf32> to vector<16x128xf32>
    %69 = arith.mulf %67, %68 : vector<16x128xf32>
    %70 = vector.broadcast %6 : vector<1x128xf32> to vector<16x128xf32>
    %71 = arith.addf %69, %70 : vector<16x128xf32>
    %cst_21 = arith.constant 5.000000e-01 : f32
    %72 = vector.broadcast %cst_21 : f32 to vector<16x128xf32>
    %73 = arith.mulf %72, %71 : vector<16x128xf32>
    %cst_22 = arith.constant 0.707106769 : f32
    %74 = vector.broadcast %cst_22 : f32 to vector<16x128xf32>
    %75 = arith.mulf %71, %74 : vector<16x128xf32>
    %76 = math.erf %75 : vector<16x128xf32>
    %cst_23 = arith.constant 1.000000e+00 : f32
    %77 = vector.broadcast %cst_23 : f32 to vector<16x128xf32>
    %78 = arith.addf %77, %76 : vector<16x128xf32>
    %79 = arith.mulf %73, %78 : vector<16x128xf32>
    %80 = arith.truncf %79 : vector<16x128xf32> to vector<16x128xbf16>
    %c0_24 = arith.constant 0 : index
    %c0_25 = arith.constant 0 : index
    %81 = vector.load %arg4[%c0_24, %c0_25] : memref<128x128xbf16, #tpu.memory_space<vmem>>, vector<128x128xbf16>
    %cst_26 = arith.constant dense<0.000000e+00> : vector<16x128xf32>
    %82 = tpu.matmul %80, %81, %cst_26 {dimension_numbers = #tpu.dot_dimension_numbers<[1], [0], [0], [1], [0, 0, 1, 1], [], []>} : vector<16x128xbf16>, vector<128x128xbf16>, vector<16x128xf32> -> vector<16x128xf32>
    %83 = vector.broadcast %7 : vector<1x128xf32> to vector<16x128xf32>
    %84 = arith.addf %82, %83 : vector<16x128xf32>
    %c0_27 = arith.constant 0 : index
    %c0_28 = arith.constant 0 : index
    %85 = vector.load %arg6[%c0_27, %c0_28] : memref<16x128xf32, #tpu.memory_space<vmem>>, vector<16x128xf32>
    tpu.vector_store %arg6[%c0_27, %c0_28], %84 {strides = array<i32>} : memref<16x128xf32, #tpu.memory_space<vmem>>, vector<16x128xf32>,
    return
  }
  func.func @transform_0(%arg0: i32) -> (i32, i32) {
    %c0_i32 = arith.constant 0 : i32
    %c0_i32_0 = arith.constant 0 : i32
    return %arg0, %c0_i32 : i32, i32
  }
  func.func @transform_1(%arg0: i32) -> (i32, i32) {
    %c0_i32 = arith.constant 0 : i32
    %c0_i32_0 = arith.constant 0 : i32
    %c0_i32_1 = arith.constant 0 : i32
    return %c0_i32, %c0_i32_0 : i32, i32
  }
  func.func @transform_2(%arg0: i32) -> (i32, i32) {
    %c0_i32 = arith.constant 0 : i32
    %c0_i32_0 = arith.constant 0 : i32
    %c0_i32_1 = arith.constant 0 : i32
    return %c0_i32, %c0_i32_0 : i32, i32
  }
  func.func @transform_3(%arg0: i32) -> (i32, i32) {
    %c0_i32 = arith.constant 0 : i32
    %c0_i32_0 = arith.constant 0 : i32
    %c0_i32_1 = arith.constant 0 : i32
    return %c0_i32, %c0_i32_0 : i32, i32
  }
  func.func @transform_4(%arg0: i32) -> (i32, i32) {
    %c0_i32 = arith.constant 0 : i32
    %c0_i32_0 = arith.constant 0 : i32
    %c0_i32_1 = arith.constant 0 : i32
    return %c0_i32, %c0_i32_0 : i32, i32
  }
  func.func @transform_5(%arg0: i32) -> (i32, i32) {
    %c0_i32 = arith.constant 0 : i32
    %c0_i32_0 = arith.constant 0 : i32
    return %arg0, %c0_i32 : i32, i32
  }
}

module attributes {stable_mosaic.version = 11 : i64} {
  func.func @_jepa_kernel(%arg0: i32, %arg1: memref<16x32xf32, #tpu.memory_space<vmem>>, %arg2: memref<32x128xbf16, #tpu.memory_space<vmem>>, %arg3: memref<128x128xbf16, #tpu.memory_space<vmem>>, %arg4: memref<128x128xbf16, #tpu.memory_space<vmem>>, %arg5: memref<8x128xf32, #tpu.memory_space<vmem>>, %arg6: memref<16x128xf32, #tpu.memory_space<vmem>>) attributes {dimension_semantics = [#tpu.dimension_semantics<parallel>], iteration_bounds = array<i64: 1>, scalar_prefetch = 0 : i64, scratch_operands = 0 : i64, tpu.core_type = #tpu.core_type<tc>, window_params = [{transform_indices = @transform_0, window_bounds = array<i64: 16, 32>}, {pipeline_mode = #tpu.pipeline_mode<synchronous>, transform_indices = @transform_1, window_bounds = array<i64: 32, 128>}, {pipeline_mode = #tpu.pipeline_mode<synchronous>, transform_indices = @transform_2, window_bounds = array<i64: 128, 128>}, {pipeline_mode = #tpu.pipeline_mode<synchronous>, transform_indices = @transform_3, window_bounds = array<i64: 128, 128>}, {pipeline_mode = #tpu.pipeline_mode<synchronous>, transform_indices = @transform_4, window_bounds = array<i64: 8, 128>}, {transform_indices = @transform_5, window_bounds = array<i64: 16, 128>}]} {
    %c0 = arith.constant 0 : index
    %c0_0 = arith.constant 0 : index
    %0 = vector.load %arg5[%c0, %c0_0] : memref<8x128xf32, #tpu.memory_space<vmem>>, vector<8x128xf32>
    %1 = vector.extract_strided_slice %0 {offsets = [0, 0], sizes = [1, 128], strides = [1, 1]} : vector<8x128xf32> to vector<1x128xf32>
    %2 = vector.extract_strided_slice %0 {offsets = [1, 0], sizes = [1, 128], strides = [1, 1]} : vector<8x128xf32> to vector<1x128xf32>
    %3 = vector.extract_strided_slice %0 {offsets = [2, 0], sizes = [1, 128], strides = [1, 1]} : vector<8x128xf32> to vector<1x128xf32>
    %4 = vector.extract_strided_slice %0 {offsets = [3, 0], sizes = [1, 128], strides = [1, 1]} : vector<8x128xf32> to vector<1x128xf32>
    %5 = vector.extract_strided_slice %0 {offsets = [4, 0], sizes = [1, 128], strides = [1, 1]} : vector<8x128xf32> to vector<1x128xf32>
    %6 = vector.extract_strided_slice %0 {offsets = [5, 0], sizes = [1, 128], strides = [1, 1]} : vector<8x128xf32> to vector<1x128xf32>
    %7 = vector.extract_strided_slice %0 {offsets = [6, 0], sizes = [1, 128], strides = [1, 1]} : vector<8x128xf32> to vector<1x128xf32>
    %8 = vector.extract_strided_slice %0 {offsets = [7, 0], sizes = [1, 128], strides = [1, 1]} : vector<8x128xf32> to vector<1x128xf32>
    %c0_1 = arith.constant 0 : index
    %c0_2 = arith.constant 0 : index
    %9 = vector.load %arg1[%c0_1, %c0_2] : memref<16x32xf32, #tpu.memory_space<vmem>>, vector<16x32xf32>
    %10 = arith.truncf %9 : vector<16x32xf32> to vector<16x32xbf16>
    %c0_3 = arith.constant 0 : index
    %c0_4 = arith.constant 0 : index
    %11 = vector.load %arg2[%c0_3, %c0_4] : memref<32x128xbf16, #tpu.memory_space<vmem>>, vector<32x128xbf16>
    %cst = arith.constant dense<0.000000e+00> : vector<16x128xf32>
    %12 = tpu.matmul %10, %11, %cst {dimension_numbers = #tpu.dot_dimension_numbers<[1], [0], [0], [1], [0, 0, 1, 1], [], []>} : vector<16x32xbf16>, vector<32x128xbf16>, vector<16x128xf32> -> vector<16x128xf32>
    %13 = vector.broadcast %1 : vector<1x128xf32> to vector<16x128xf32>
    %14 = arith.addf %12, %13 : vector<16x128xf32>
    %cst_5 = arith.constant dense<0.000000e+00> : vector<16xf32>
    %15 = vector.multi_reduction <add>, %14, %cst_5 [1] : vector<16x128xf32> to vector<16xf32>
    %16 = vector.shape_cast %15 : vector<16xf32> to vector<16x1xf32>
    %cst_6 = arith.constant 1.562500e-02 : f32
    %17 = vector.broadcast %cst_6 : f32 to vector<16x1xf32>
    %18 = arith.mulf %16, %17 : vector<16x1xf32>
    %19 = vector.broadcast %18 : vector<16x1xf32> to vector<16x128xf32>
    %20 = arith.subf %14, %19 : vector<16x128xf32>
    %21 = vector.broadcast %8 : vector<1x128xf32> to vector<16x128xf32>
    %22 = arith.mulf %20, %21 : vector<16x128xf32>
    %23 = arith.mulf %22, %22 : vector<16x128xf32>
    %cst_7 = arith.constant dense<0.000000e+00> : vector<16xf32>
    %24 = vector.multi_reduction <add>, %23, %cst_7 [1] : vector<16x128xf32> to vector<16xf32>
    %25 = vector.shape_cast %24 : vector<16xf32> to vector<16x1xf32>
    %cst_8 = arith.constant 1.562500e-02 : f32
    %26 = vector.broadcast %cst_8 : f32 to vector<16x1xf32>
    %27 = arith.mulf %25, %26 : vector<16x1xf32>
    %cst_9 = arith.constant 9.99999974E-6 : f32
    %28 = vector.broadcast %cst_9 : f32 to vector<16x1xf32>
    %29 = arith.addf %27, %28 : vector<16x1xf32>
    %30 = math.rsqrt %29 : vector<16x1xf32>
    %31 = vector.broadcast %30 : vector<16x1xf32> to vector<16x128xf32>
    %32 = arith.mulf %20, %31 : vector<16x128xf32>
    %33 = vector.broadcast %2 : vector<1x128xf32> to vector<16x128xf32>
    %34 = arith.mulf %32, %33 : vector<16x128xf32>
    %35 = vector.broadcast %3 : vector<1x128xf32> to vector<16x128xf32>
    %36 = arith.addf %34, %35 : vector<16x128xf32>
    %cst_10 = arith.constant 5.000000e-01 : f32
    %37 = vector.broadcast %cst_10 : f32 to vector<16x128xf32>
    %38 = arith.mulf %37, %36 : vector<16x128xf32>
    %cst_11 = arith.constant 0.707106769 : f32
    %39 = vector.broadcast %cst_11 : f32 to vector<16x128xf32>
    %40 = arith.mulf %36, %39 : vector<16x128xf32>
    %41 = math.erf %40 : vector<16x128xf32>
    %cst_12 = arith.constant 1.000000e+00 : f32
    %42 = vector.broadcast %cst_12 : f32 to vector<16x128xf32>
    %43 = arith.addf %42, %41 : vector<16x128xf32>
    %44 = arith.mulf %38, %43 : vector<16x128xf32>
    %45 = arith.truncf %44 : vector<16x128xf32> to vector<16x128xbf16>
    %c0_13 = arith.constant 0 : index
    %c0_14 = arith.constant 0 : index
    %46 = vector.load %arg3[%c0_13, %c0_14] : memref<128x128xbf16, #tpu.memory_space<vmem>>, vector<128x128xbf16>
    %cst_15 = arith.constant dense<0.000000e+00> : vector<16x128xf32>
    %47 = tpu.matmul %45, %46, %cst_15 {dimension_numbers = #tpu.dot_dimension_numbers<[1], [0], [0], [1], [0, 0, 1, 1], [], []>} : vector<16x128xbf16>, vector<128x128xbf16>, vector<16x128xf32> -> vector<16x128xf32>
    %48 = vector.broadcast %4 : vector<1x128xf32> to vector<16x128xf32>
    %49 = arith.addf %47, %48 : vector<16x128xf32>
    %cst_16 = arith.constant dense<0.000000e+00> : vector<16xf32>
    %50 = vector.multi_reduction <add>, %49, %cst_16 [1] : vector<16x128xf32> to vector<16xf32>
    %51 = vector.shape_cast %50 : vector<16xf32> to vector<16x1xf32>
    %cst_17 = arith.constant 1.562500e-02 : f32
    %52 = vector.broadcast %cst_17 : f32 to vector<16x1xf32>
    %53 = arith.mulf %51, %52 : vector<16x1xf32>
    %54 = vector.broadcast %53 : vector<16x1xf32> to vector<16x128xf32>
    %55 = arith.subf %49, %54 : vector<16x128xf32>
    %56 = vector.broadcast %8 : vector<1x128xf32> to vector<16x128xf32>
    %57 = arith.mulf %55, %56 : vector<16x128xf32>
    %58 = arith.mulf %57, %57 : vector<16x128xf32>
    %cst_18 = arith.constant dense<0.000000e+00> : vector<16xf32>
    %59 = vector.multi_reduction <add>, %58, %cst_18 [1] : vector<16x128xf32> to vector<16xf32>
    %60 = vector.shape_cast %59 : vector<16xf32> to vector<16x1xf32>
    %cst_19 = arith.constant 1.562500e-02 : f32
    %61 = vector.broadcast %cst_19 : f32 to vector<16x1xf32>
    %62 = arith.mulf %60, %61 : vector<16x1xf32>
    %cst_20 = arith.constant 9.99999974E-6 : f32
    %63 = vector.broadcast %cst_20 : f32 to vector<16x1xf32>
    %64 = arith.addf %62, %63 : vector<16x1xf32>
    %65 = math.rsqrt %64 : vector<16x1xf32>
    %66 = vector.broadcast %65 : vector<16x1xf32> to vector<16x128xf32>
    %67 = arith.mulf %55, %66 : vector<16x128xf32>
    %68 = vector.broadcast %5 : vector<1x128xf32> to vector<16x128xf32>
    %69 = arith.mulf %67, %68 : vector<16x128xf32>
    %70 = vector.broadcast %6 : vector<1x128xf32> to vector<16x128xf32>
    %71 = arith.addf %69, %70 : vector<16x128xf32>
    %cst_21 = arith.constant 5.000000e-01 : f32
    %72 = vector.broadcast %cst_21 : f32 to vector<16x128xf32>
    %73 = arith.mulf %72, %71 : vector<16x128xf32>
    %cst_22 = arith.constant 0.707106769 : f32
    %74 = vector.broadcast %cst_22 : f32 to vector<16x128xf32>
    %75 = arith.mulf %71, %74 : vector<16x128xf32>
    %76 = math.erf %75 : vector<16x128xf32>
    %cst_23 = arith.constant 1.000000e+00 : f32
    %77 = vector.broadcast %cst_23 : f32 to vector<16x128xf32>
    %78 = arith.addf %77, %76 : vector<16x128xf32>
    %79 = arith.mulf %73, %78 : vector<16x128xf32>
    %80 = arith.truncf %79 : vector<16x128xf32> to vector<16x128xbf16>
    %c0_24 = arith.constant 0 : index
    %c0_25 = arith.constant 0 : index
    %81 = vector.load %arg4[%c0_24, %c0_25] : memref<128x128xbf16, #tpu.memory_space<vmem>>, vector<128x128xbf16>
    %cst_26 = arith.constant dense<0.000000e+00> : vector<16x128xf32>
    %82 = tpu.matmul %80, %81, %cst_26 {dimension_numbers = #tpu.dot_dimension_numbers<[1], [0], [0], [1], [0, 0, 1, 1], [], []>} : vector<16x128xbf16>, vector<128x128xbf16>, vector<16x128xf32> -> vector<16x128xf32>
    %83 = vector.broadcast %7 : vector<1x128xf32> to vector<16x128xf32>
    %84 = arith.addf %82, %83 : vector<16x128xf32>
    %c0_27 = arith.constant 0 : index
    %c0_28 = arith.constant 0 : index
    %85 = vector.load %arg6[%c0_27, %c0_28] : memref<16x128xf32, #tpu.memory_space<vmem>>, vector<16x128xf32>
    tpu.vector_store %arg6[%c0_27, %c0_28], %84 {strides = array<i32>} : memref<16x128xf32, #tpu.memory_space<vmem>>, vector<16x128xf32>,
    return
  }
  func.func @transform_0(%arg0: i32) -> (i32, i32) {
    %c0_i32 = arith.constant 0 : i32
    %c0_i32_0 = arith.constant 0 : i32
    return %arg0, %c0_i32 : i32, i32
  }
  func.func @transform_1(%arg0: i32) -> (i32, i32) {
    %c0_i32 = arith.constant 0 : i32
    %c0_i32_0 = arith.constant 0 : i32
    %c0_i32_1 = arith.constant 0 : i32
    return %c0_i32, %c0_i32_0 : i32, i32
  }
  func.func @transform_2(%arg0: i32) -> (i32, i32) {
    %c0_i32 = arith.constant 0 : i32
    %c0_i32_0 = arith.constant 0 : i32
    %c0_i32_1 = arith.constant 0 : i32
    return %c0_i32, %c0_i32_0 : i32, i32
  }
  func.func @transform_3(%arg0: i32) -> (i32, i32) {
    %c0_i32 = arith.constant 0 : i32
    %c0_i32_0 = arith.constant 0 : i32
    %c0_i32_1 = arith.constant 0 : i32
    return %c0_i32, %c0_i32_0 : i32, i32
  }
  func.func @transform_4(%arg0: i32) -> (i32, i32) {
    %c0_i32 = arith.constant 0 : i32
    %c0_i32_0 = arith.constant 0 : i32
    %c0_i32_1 = arith.constant 0 : i32
    return %c0_i32, %c0_i32_0 : i32, i32
  }
  func.func @transform_5(%arg0: i32) -> (i32, i32) {
    %c0_i32 = arith.constant 0 : i32
    %c0_i32_0 = arith.constant 0 : i32
    return %arg0, %c0_i32 : i32, i32
  }
}

</mosaic_0001>

<bundles_post_ra>
// kernel: tpu_custom_call.1
= control target key start
LH: loop header
LB: loop body
LE: loop exit
PB: predicated region body
PF: predicated region fallthrough
CT: control target
= control target key end

     0   :  { %10 = vsyncpa [#allocation3], 0  ;;  %s907_s0 = inlined_call_operand.hbm [shape: f32[16,32], index: 0, kind: input, shape index: {}]   ;;  %s908_s1 = inlined_call_operand.hbm [shape: bf16[32,128], index: 1, kind: input, shape index: {}]   ;;  %s909_s2 = inlined_call_operand.hbm [shape: bf16[128,128], index: 2, kind: input, shape index: {}]   ;;  %s910_s3 = inlined_call_operand.hbm [shape: bf16[128,128], index: 3, kind: input, shape index: {}]   ;;  %s911_s4 = inlined_call_operand.vmem [shape: f32[8,128], index: 4, kind: input, shape index: {}]   ;;  %s912_s5 = inlined_call_operand.hbm [shape: f32[16,128], index: 5, kind: output, shape index: {}]  }
   0x1   :  { %11 = vsyncpa [#allocation6], 0 }
   0x2   :  { %12 = vsyncpa [#allocation9], 0 }
   0x3   :  { %13 = vsyncpa [#allocation4], 0  ;;  %s734_s18 = smov [#allocation5]   ;;  %s616_s22 = scalar_lea.hbm %s908_s1, 256 }
   0x4   :  { %s31_s19 = sshll.u32 %s734_s18, 4  ;;  %p617_p0 = scmp.ne.s32.totalorder %s908_s1, %s616_s22  ;;  %s32_s19 = int_to_ptr.vmem [resolvable:$true] %s31_s19 }
   0x5   :  { %p620_p1 = scmp.lt.u32.totalorder %s616_s22, %s908_s1 }
   0x7   :  { %p622_p2 = pnand %p620_p1, %p617_p0 }
   0x9   :  { %625 = shalt.err (!%p622_p2)
}
   0xa   :  { %s626_s27 = scalar_lea.vmem %s32_s19, 256  ;;  %p631_p4 = scmp.lt.s32.totalorder %s32_s19, %s32_s19 }
   0xb   :  { %p627_p3 = scmp.ne.s32.totalorder %s32_s19, %s626_s27  ;;  %p632_p5 = scmp.lt.s32.totalorder %s626_s27, %s626_s27 }
   0xd   :  { %p633_p6 = por %p632_p5, %p631_p4 }
   0xf   :  { %p634_p7 = pnand %p633_p6, %p627_p3 }
  0x11   :  { %637 = shalt.err (!%p634_p7)
}
  0x12   :  { %s735_s28 = smov 64   ;;  %s736_s29 = smov 4  }
  0x13   :  { %37 = dma.hbm_to_vmem [thread:$0]  %s908_s1, 256, %s32_s19, [#allocation6], %s735_s28, %s735_s28, %s736_s29  }
  0x14   :  { %s737_s7 = smov [#allocation2]   ;;  %s638_s11 = scalar_lea.hbm %s907_s0, 256 }
  0x15   :  { %s19_s8 = sshll.u32 %s737_s7, 4  ;;  %p639_p8 = scmp.ne.s32.totalorder %s907_s0, %s638_s11  ;;  %s20_s8 = int_to_ptr.vmem [resolvable:$true] %s19_s8 }
  0x16   :  { %p642_p9 = scmp.lt.u32.totalorder %s638_s11, %s907_s0 }
  0x18   :  { %p644_p10 = pnand %p642_p9, %p639_p8 }
  0x1a   :  { %647 = shalt.err (!%p644_p10)
}
  0x1b   :  { %s648_s16 = scalar_lea.vmem %s20_s8, 256  ;;  %p653_p12 = scmp.lt.s32.totalorder %s20_s8, %s20_s8 }
  0x1c   :  { %p649_p11 = scmp.ne.s32.totalorder %s20_s8, %s648_s16  ;;  %p654_p13 = scmp.lt.s32.totalorder %s648_s16, %s648_s16 }
  0x1e   :  { %p655_p0 = por %p654_p13, %p653_p12 }
  0x20   :  { %p656_p1 = pnand %p655_p0, %p649_p11 }
  0x22   :  { %659 = shalt.err (!%p656_p1)
}
  0x23   :  { %s738_s1 = smov 128   ;;  %s739_s17 = smov 8  }
  0x24   :  { %25 = dma.hbm_to_vmem [thread:$0]  %s907_s0, 256, %s20_s8, [#allocation3], %s738_s1, %s738_s1, %s739_s17  }
  0x25   :  { %s740_s20 = smov [#allocation7]   ;;  %s741_s22 = smov [#allocation8]  }
  0x26   :  { %s43_s21 = sshll.u32 %s740_s20, 4  ;;  %s55_s23 = sshll.u32 %s741_s22, 4  ;;  %s44_s21 = int_to_ptr.vmem [resolvable:$true] %s43_s21  ;;  %s805_s23 = int_to_ptr.vmem [resolvable:$true] %s55_s23 }
  0x27   :  { %s660_s26 = scalar_lea.hbm %s909_s2, 1024 }
  0x28   :  { %p661_p2 = scmp.ne.s32.totalorder %s909_s2, %s660_s26  ;;  %p664_p3 = scmp.lt.u32.totalorder %s660_s26, %s909_s2 }
  0x2a   :  { %p666_p4 = pnand %p664_p3, %p661_p2 }
  0x2c   :  { %669 = shalt.err (!%p666_p4)
}
  0x2d   :  { %s670_s0 = scalar_lea.vmem %s44_s21, 1024  ;;  %p675_p6 = scmp.lt.s32.totalorder %s44_s21, %s44_s21 }
  0x2e   :  { %p671_p5 = scmp.ne.s32.totalorder %s44_s21, %s670_s0  ;;  %p676_p7 = scmp.lt.s32.totalorder %s670_s0, %s670_s0 }
  0x30   :  { %p677_p8 = por %p676_p7, %p675_p6 }
  0x32   :  { %p678_p9 = pnand %p677_p8, %p671_p5 }
  0x34   :  { %681 = shalt.err (!%p678_p9)
}
  0x35   :  { %49 = dma.hbm_to_vmem [thread:$0]  %s909_s2, 1024, %s44_s21, [#allocation6], %s735_s28, %s735_s28, %s736_s29  }
  0x36   :  { %s682_s12 = scalar_lea.hbm %s910_s3, 1024 }
  0x37   :  { %p683_p10 = scmp.ne.s32.totalorder %s910_s3, %s682_s12  ;;  %p686_p11 = scmp.lt.u32.totalorder %s682_s12, %s910_s3 }
  0x39   :  { %p688_p12 = pnand %p686_p11, %p683_p10 }
  0x3b   :  { %691 = shalt.err (!%p688_p12)
}
  0x3c   :  { %s692_s18 = scalar_lea.vmem %s805_s23, 1024  ;;  %p697_p0 = scmp.lt.s32.totalorder %s805_s23, %s805_s23 }
  0x3d   :  { %p693_p13 = scmp.ne.s32.totalorder %s805_s23, %s692_s18  ;;  %p698_p1 = scmp.lt.s32.totalorder %s692_s18, %s692_s18 }
  0x3f   :  { %p699_p2 = por %p698_p1, %p697_p0 }
  0x41   :  { %p700_p3 = pnand %p699_p2, %p693_p13 }
  0x43   :  { %703 = shalt.err (!%p700_p3)
}
  0x44   :  { %61 = dma.hbm_to_vmem [thread:$0]  %s910_s3, 1024, %s805_s23, [#allocation9], %s735_s28, %s735_s28, %s736_s29  }
  0x45   :  { %726 = dma.done.wait [#allocation3], 256  }
  0x46   :  { %727 = vsyncadd [#allocation3], 4294967040 }
  0x47   :  { %728 = dma.done.wait [#allocation6], 1280  }
  0x48   :  { %729 = vsyncadd [#allocation6], 4294966016 }
  0x49   :  { %730 = dma.done.wait [#allocation9], 1024  }
  0x4a   :  { %731 = vsyncadd [#allocation9], 4294966272  ;;  %v742_v0 = vmov 0.0   ;;  %vm743_vm0 = vmmov 0   ;;  %v582_v1 = vld [vmem:[#allocation5] sm:$0xff]   ;;  %v583_v2 = vld [vmem:[#allocation5 + $0x8] sm:$0xff]   ;;  %v85_v6 = vlaneseq }
  0x4b   :  { %523 = vmatprep.subr.bf16.mxu0 %v742_v0  ;;  %527 = vmatprep.mubr.msk.bf16.mxu0 %vm743_vm0, %v742_v0  ;;  %v78_v3 = vld [vmem:[#allocation2] sm:$0xff]  ;;  %v79_v4 = vld [vmem:[#allocation2 + $0x8] sm:$0xff]  ;;  %vm101_vm1 = vcmask 261120   ;;  %v586_v31 = vld [vmem:[#allocation7 + $0x10] sm:$0xff]  }
  0x4c   :  { %531 = vmatprep.subr.bf16.mxu1 %v742_v0  ;;  %547 = vmatprep.mubr.msk.bf16.mxu1 %vm743_vm0, %v742_v0  ;;  %v80_v5 = vpack.c.bf16 %v79_v4, %v78_v3  ;;  %v849_v7 = vshrl.u32 %v85_v6, 7  ;;  %v855_v9 = vld [vmem:[%s911_s4] sm:$0xff]  ;;  %v585_v30 = vld [vmem:[#allocation7 + $0x8] sm:$0xff]   ;;  %v587_v32 = vld [vmem:[#allocation7 + $0x18] sm:$0xff]   ;;  %s744_s4 = smov [#allocation10]  }
  0x4d   :  { %524 = vmatpush3.bf16.msra.mxu0 %v582_v1  ;;  %v584_v29 = vld [vmem:[#allocation7] sm:$0xff]   ;;  %v589_v34 = vld [vmem:[#allocation7 + $0x28] sm:$0xff]   ;;  %v590_v35 = vld [vmem:[#allocation7 + $0x30] sm:$0xff]   ;;  %s469_s29 = sshll.u32 %s744_s4, 4  ;;  %s470_s29 = int_to_ptr.vmem [resolvable:$true] %s469_s29 }
  0x4e   :  { %525 = vmatprep.subr.bf16.mxu0 %v742_v0  ;;  %v87_v8 = vsub.s32 0, %v849_v7  ;;  %v156_v17 = vsub.s32 7, %v849_v7  ;;  %532 = vmatpush3.bf16.msra.mxu1 %v584_v29  ;;  %v588_v33 = vld [vmem:[#allocation7 + $0x20] sm:$0xff]   ;;  %v591_v36 = vld [vmem:[#allocation7 + $0x38] sm:$0xff]   ;;  %v176_v43 = vsub.s32 1, %v849_v7  ;;  %v182_v44 = vsub.s32 2, %v849_v7  ;;  %p709_p5 = scmp.lt.s32.totalorder %s470_s29, %s470_s29 }
  0x4f   :  { %533 = vmatprep.subr.bf16.mxu1 %v742_v0  ;;  %v215_v3 = vsub.s32 3, %v849_v7  ;;  %v598_v29 = vld [vmem:[#allocation8 + $0x30] sm:$0xff]   ;;  %s704_s20 = scalar_lea.vmem %s470_s29, 256 }
  0x50   :  { %v88_v10 = vrot.slane %v855_v9, %v87_v8  ;;  %v860_v20 = vrot.slane %v855_v9, %v156_v17  ;;  %v177_v45 = vrot.slane %v855_v9, %v176_v43  ;;  %v183_v48 = vrot.slane %v855_v9, %v182_v44  ;;  %p705_p4 = scmp.ne.s32.totalorder %s470_s29, %s704_s20  ;;  %p710_p6 = scmp.lt.s32.totalorder %s704_s20, %s704_s20 }
  0x51   :  { %526 = vmatpush3.bf16.msra.mxu0 %v583_v2  ;;  %v216_v4 = vrot.slane %v855_v9, %v215_v3 }
  0x52   :  { %551 = vmatprep.subr.bf16.mxu0 %v742_v0  ;;  %534 = vmatpush3.bf16.msra.mxu1 %v585_v30  ;;  %v599_v30 = vld [vmem:[#allocation8 + $0x38] sm:$0xff]   ;;  %p711_p7 = por %p710_p6, %p709_p5 }
  0x53   :  { %535 = vmatprep.subr.bf16.mxu1 %v742_v0 }
  0x54   :  { %528 = vmatmul.mubr.msk.bf16.vlgmr.msra.gmra.mrb[0].mxu0 %vm101_vm1, %v80_v5  ;;  %p712_p8 = pnand %p711_p7, %p705_p4 }
  0x55   :  { %567 = vmatprep.mubr.msk.bf16.mxu0 %vm743_vm0, %v742_v0 }
  0x56   :  { %536 = vmatpush3.bf16.msra.mxu1 %v586_v31 }
  0x57   :  { %537 = vmatprep.subr.bf16.mxu1 %v742_v0 }
  0x5a   :  { %538 = vmatpush3.bf16.msra.mxu1 %v587_v32 }
  0x5b   :  { %539 = vmatprep.subr.bf16.mxu1 %v742_v0 }
  0x5e   :  { %540 = vmatpush3.bf16.msra.mxu1 %v588_v33 }
  0x5f   :  { %541 = vmatprep.subr.bf16.mxu1 %v742_v0 }
  0x62   :  { %542 = vmatpush3.bf16.msra.mxu1 %v589_v34 }
  0x63   :  { %543 = vmatprep.subr.bf16.mxu1 %v742_v0 }
  0x66   :  { %544 = vmatpush3.bf16.msra.mxu1 %v590_v35 }
  0x67   :  { %545 = vmatprep.subr.bf16.mxu1 %v742_v0 }
  0x6a   :  { %546 = vmatpush3.bf16.msra.mxu1 %v591_v36 }
 0x127   :  { %v139_v11 = vpop.f32.mrb[0].mxu0 }
 0x128   :  { %v140_v12 = vadd.f32 %v139_v11, %v88_v10  ;;  %v529_v13 = vpop.f32.mrb[1].mxu0 }
 0x129   :  { %v142_v14 = vpop.f32.mrb[2].mxu0 }
 0x12a   :  { %v530_v15 = vpop.f32.mrb[3].mxu0  ;;  %146 = vadd.xlane.f32.xlu0 %v140_v12  ;;  %v143_v16 = vadd.f32 %v142_v14, %v88_v10 }
 0x12e   :  { %148 = vadd.xlane.f32.xlu0 %v143_v16 }
 0x1b7   :  { %v147_v18 = vpop.xlane.xlu0 %146 }
 0x1b8   :  { %v150_v19 = vmul.f32 0.015625, %v147_v18 }
 0x1ba   :  { %v152_v21 = vsub.f32 %v140_v12, %v150_v19 }
 0x1bb   :  { %v149_v22 = vpop.xlane.xlu0 %148 }
 0x1bc   :  { %v151_v23 = vmul.f32 0.015625, %v149_v22  ;;  %v158_v24 = vmul.f32 %v860_v20, %v152_v21 }
 0x1be   :  { %v153_v25 = vsub.f32 %v143_v16, %v151_v23  ;;  %v160_v26 = vmul.f32 %v158_v24, %v158_v24  ;;  %v592_v24 = vld [vmem:[#allocation8] sm:$0xff]  }
 0x1bf   :  { %552 = vmatpush3.bf16.msra.mxu0 %v592_v24 }
 0x1c0   :  { %162 = vadd.xlane.f32.xlu1 %v160_v26  ;;  %v159_v27 = vmul.f32 %v860_v20, %v153_v25  ;;  %553 = vmatprep.subr.bf16.mxu0 %v742_v0  ;;  %v594_v26 = vld [vmem:[#allocation8 + $0x10] sm:$0xff]  }
 0x1c2   :  { %v161_v28 = vmul.f32 %v159_v27, %v159_v27  ;;  %v595_v27 = vld [vmem:[#allocation8 + $0x18] sm:$0xff]  }
 0x1c4   :  { %164 = vadd.xlane.f32.xlu1 %v161_v28  ;;  %v596_v28 = vld [vmem:[#allocation8 + $0x20] sm:$0xff]  }
 0x24d   :  { %v163_v37 = vpop.xlane.xlu1 %162 }
 0x24e   :  { %v166_v38 = vmul.f32 0.015625, %v163_v37  ;;  %v332_v37 = vsub.s32 4, %v849_v7 }
 0x250   :  { %v168_v39 = vadd.f32 1e-05, %v166_v38  ;;  %v338_v38 = vsub.s32 5, %v849_v7 }
 0x251   :  { %v165_v40 = vpop.xlane.xlu1 %164 }
 0x252   :  { %600 = vrsqrt.f32 %v168_v39  ;;  %v167_v41 = vmul.f32 0.015625, %v165_v40  ;;  %v333_v39 = vrot.slane %v855_v9, %v332_v37 }
 0x254   :  { %v169_v42 = vadd.f32 1e-05, %v167_v41 }
 0x256   :  { %602 = vrsqrt.f32 %v169_v42  ;;  %v339_v42 = vrot.slane %v855_v9, %v338_v38 }
 0x25c   :  { %v601_v46 = vpop.eup %600 }
 0x25d   :  { %v172_v47 = vmul.f32 %v601_v46, %v152_v21 }
 0x25f   :  { %v178_v49 = vmul.f32 %v177_v45, %v172_v47 }
 0x260   :  { %v603_v50 = vpop.eup %602 }
 0x261   :  { %v173_v51 = vmul.f32 %v603_v50, %v153_v25  ;;  %v184_v52 = vadd.f32 %v183_v48, %v178_v49  ;;  %v593_v25 = vld [vmem:[#allocation8 + $0x8] sm:$0xff]  }
 0x262   :  { %554 = vmatpush3.bf16.msra.mxu0 %v593_v25 }
 0x263   :  { %v179_v53 = vmul.f32 %v177_v45, %v173_v51  ;;  %v188_v54 = vmul.f32 0.70710677, %v184_v52  ;;  %v186_v60 = vmul.f32 0.5, %v184_v52  ;;  %555 = vmatprep.subr.bf16.mxu0 %v742_v0 }
 0x265   :  { %v185_v55 = vadd.f32 %v183_v48, %v179_v53  ;;  %604 = verf.f32 %v188_v54 }
 0x266   :  { %556 = vmatpush3.bf16.msra.mxu0 %v594_v26 }
 0x267   :  { %v189_v56 = vmul.f32 0.70710677, %v185_v55  ;;  %v187_v61 = vmul.f32 0.5, %v185_v55  ;;  %557 = vmatprep.subr.bf16.mxu0 %v742_v0 }
 0x269   :  { %606 = verf.f32 %v189_v56 }
 0x26a   :  { %558 = vmatpush3.bf16.msra.mxu0 %v595_v27 }
 0x26b   :  { %559 = vmatprep.subr.bf16.mxu0 %v742_v0 }
 0x26e   :  { %560 = vmatpush3.bf16.msra.mxu0 %v596_v28 }
 0x26f   :  { %v605_v57 = vpop.eup %604  ;;  %561 = vmatprep.subr.bf16.mxu0 %v742_v0 }
 0x270   :  { %v192_v58 = vadd.f32 1.0, %v605_v57 }
 0x272   :  { %v194_v63 = vmul.f32 %v192_v58, %v186_v60 }
 0x273   :  { %v607_v59 = vpop.eup %606 }
 0x274   :  { %v193_v62 = vadd.f32 1.0, %v607_v59  ;;  %v371_v59 = vsub.s32 6, %v849_v7 }
 0x276   :  { %v195_v1 = vmul.f32 %v193_v62, %v187_v61  ;;  %v372_v60 = vrot.slane %v855_v9, %v371_v59 }
 0x278   :  { %v196_v2 = vpack.c.bf16 %v195_v1, %v194_v63 }
 0x27a   :  { %548 = vmatmul.mubr.bf16.vlgmr.msra.gmra.mrb[0].mxu1 %v196_v2 }
 0x34d   :  { %v299_v5 = vpop.f32.mrb[0].mxu1 }
 0x34e   :  { %v300_v6 = vadd.f32 %v299_v5, %v216_v4  ;;  %v549_v8 = vpop.f32.mrb[1].mxu1 }
 0x34f   :  { %v302_v10 = vpop.f32.mrb[2].mxu1 }
 0x350   :  { %v303_v11 = vadd.f32 %v302_v10, %v216_v4  ;;  %306 = vadd.xlane.f32.xlu0 %v300_v6  ;;  %v550_v12 = vpop.f32.mrb[3].mxu1 }
 0x352   :  { %308 = vadd.xlane.f32.xlu1 %v303_v11 }
 0x3dd   :  { %v307_v13 = vpop.xlane.xlu0 %306 }
 0x3de   :  { %v310_v14 = vmul.f32 0.015625, %v307_v13 }
 0x3df   :  { %v309_v15 = vpop.xlane.xlu1 %308 }
 0x3e0   :  { %v312_v16 = vsub.f32 %v300_v6, %v310_v14  ;;  %v311_v17 = vmul.f32 0.015625, %v309_v15 }
 0x3e2   :  { %v313_v18 = vsub.f32 %v303_v11, %v311_v17  ;;  %v314_v19 = vmul.f32 %v312_v16, %v860_v20 }
 0x3e4   :  { %v316_v21 = vmul.f32 %v314_v19, %v314_v19  ;;  %v315_v22 = vmul.f32 %v313_v18, %v860_v20  ;;  %v597_v20 = vld [vmem:[#allocation8 + $0x28] sm:$0xff]  }
 0x3e5   :  { %562 = vmatpush3.bf16.msra.mxu0 %v597_v20 }
 0x3e6   :  { %318 = vadd.xlane.f32.xlu0 %v316_v21  ;;  %v317_v23 = vmul.f32 %v315_v22, %v315_v22  ;;  %563 = vmatprep.subr.bf16.mxu0 %v742_v0 }
 0x3e8   :  { %320 = vadd.xlane.f32.xlu1 %v317_v23 }
 0x3e9   :  { %564 = vmatpush3.bf16.msra.mxu0 %v598_v29 }
 0x3ea   :  { %565 = vmatprep.subr.bf16.mxu0 %v742_v0 }
 0x3ed   :  { %566 = vmatpush3.bf16.msra.mxu0 %v599_v30 }
 0x473   :  { %v319_v31 = vpop.xlane.xlu0 %318 }
 0x474   :  { %v322_v32 = vmul.f32 0.015625, %v319_v31 }
 0x475   :  { %v321_v33 = vpop.xlane.xlu1 %320 }
 0x476   :  { %v324_v34 = vadd.f32 1e-05, %v322_v32  ;;  %v323_v35 = vmul.f32 0.015625, %v321_v33 }
 0x478   :  { %608 = vrsqrt.f32 %v324_v34  ;;  %v325_v36 = vadd.f32 1e-05, %v323_v35 }
 0x47a   :  { %610 = vrsqrt.f32 %v325_v36 }
 0x482   :  { %v609_v40 = vpop.eup %608 }
 0x483   :  { %v328_v41 = vmul.f32 %v609_v40, %v312_v16 }
 0x484   :  { %v611_v0 = vpop.eup %610 }
 0x485   :  { %v334_v43 = vmul.f32 %v333_v39, %v328_v41  ;;  %v329_v44 = vmul.f32 %v611_v0, %v313_v18 }
 0x487   :  { %v335_v45 = vmul.f32 %v333_v39, %v329_v44  ;;  %v340_v46 = vadd.f32 %v339_v42, %v334_v43 }
 0x489   :  { %v341_v47 = vadd.f32 %v339_v42, %v335_v45  ;;  %v344_v48 = vmul.f32 0.70710677, %v340_v46  ;;  %v342_v53 = vmul.f32 0.5, %v340_v46 }
 0x48b   :  { %v345_v49 = vmul.f32 0.70710677, %v341_v47  ;;  %612 = verf.f32 %v344_v48  ;;  %v343_v54 = vmul.f32 0.5, %v341_v47 }
 0x48d   :  { %614 = verf.f32 %v345_v49 }
 0x495   :  { %v613_v50 = vpop.eup %612 }
 0x496   :  { %v348_v51 = vadd.f32 1.0, %v613_v50 }
 0x497   :  { %v615_v52 = vpop.eup %614 }
 0x498   :  { %v349_v55 = vadd.f32 1.0, %v615_v52  ;;  %v350_v56 = vmul.f32 %v348_v51, %v342_v53 }
 0x49a   :  { %v351_v57 = vmul.f32 %v349_v55, %v343_v54 }
 0x49c   :  { %v352_v58 = vpack.c.bf16 %v351_v57, %v350_v56 }
 0x49e   :  { %568 = vmatmul.mubr.bf16.vlgmr.msra.gmra.mrb[4].mxu0 %v352_v58 }
 0x571   :  { %v455_v61 = vpop.f32.mrb[4].mxu0 }
 0x572   :  { %v456_v62 = vadd.f32 %v455_v61, %v372_v60  ;;  %v569_v63 = vpop.f32.mrb[5].mxu0 }
 0x573   :  { %v458_v1 = vpop.f32.mrb[6].mxu0 }
 0x574   :  { %462 = vst [vmem:[#allocation10] sm:$0xff] %v456_v62  ;;  %v459_v2 = vadd.f32 %v458_v1, %v372_v60  ;;  %v570_v3 = vpop.f32.mrb[7].mxu0 }
 0x576   :  { %463 = vst [vmem:[#allocation10 + $0x8] sm:$0xff] %v459_v2 }
 0x577   :  { %715 = shalt.err (!%p712_p8)
}
 0x578   :  { %s716_s23 = scalar_lea.hbm %s912_s5, 256 }
 0x579   :  { %p717_p9 = scmp.ne.s32.totalorder %s912_s5, %s716_s23  ;;  %p720_p10 = scmp.lt.u32.totalorder %s716_s23, %s912_s5 }
 0x57b   :  { %p722_p11 = pnand %p720_p10, %p717_p9 }
 0x57d   :  { %725 = shalt.err (!%p722_p11)
}
 0x57e   :  { %475 = dma.vmem_to_hbm [thread:$0]  %s470_s29, 256, %s912_s5, [#allocation4], %s738_s1, %s738_s1, %s739_s17  }
 0x57f   :  { %732 = dma.done.wait [#allocation4], 256  }
 0x580   :  { %733 = vsyncadd [#allocation4], 4294967040 }
 0x581   :  { %479 = vsyncpa [#allocation3], 1 }
 0x582   :  { %480 = vsyncpa [#allocation6], 1 }
 0x583   :  { %481 = vsyncpa [#allocation9], 1 }
 0x584   :  { %482 = vsyncpa [#allocation4], 1 }

// kernel: tpu_custom_call.1
= control target key start
LH: loop header
LB: loop body
LE: loop exit
PB: predicated region body
PF: predicated region fallthrough
CT: control target
= control target key end

     0   :  { %10 = vsyncpa [#allocation3], 0  ;;  %s907_s0 = inlined_call_operand.hbm [shape: f32[16,32], index: 0, kind: input, shape index: {}]   ;;  %s908_s1 = inlined_call_operand.hbm [shape: bf16[32,128], index: 1, kind: input, shape index: {}]   ;;  %s909_s2 = inlined_call_operand.hbm [shape: bf16[128,128], index: 2, kind: input, shape index: {}]   ;;  %s910_s3 = inlined_call_operand.hbm [shape: bf16[128,128], index: 3, kind: input, shape index: {}]   ;;  %s911_s4 = inlined_call_operand.vmem [shape: f32[8,128], index: 4, kind: input, shape index: {}]   ;;  %s912_s5 = inlined_call_operand.hbm [shape: f32[16,128], index: 5, kind: output, shape index: {}]  }
   0x1   :  { %11 = vsyncpa [#allocation6], 0 }
   0x2   :  { %12 = vsyncpa [#allocation9], 0 }
   0x3   :  { %13 = vsyncpa [#allocation4], 0  ;;  %s734_s18 = smov [#allocation5]   ;;  %s616_s22 = scalar_lea.hbm %s908_s1, 256 }
   0x4   :  { %s31_s19 = sshll.u32 %s734_s18, 4  ;;  %p617_p0 = scmp.ne.s32.totalorder %s908_s1, %s616_s22  ;;  %s32_s19 = int_to_ptr.vmem [resolvable:$true] %s31_s19 }
   0x5   :  { %p620_p1 = scmp.lt.u32.totalorder %s616_s22, %s908_s1 }
   0x7   :  { %p622_p2 = pnand %p620_p1, %p617_p0 }
   0x9   :  { %625 = shalt.err (!%p622_p2)
}
   0xa   :  { %s626_s27 = scalar_lea.vmem %s32_s19, 256  ;;  %p631_p4 = scmp.lt.s32.totalorder %s32_s19, %s32_s19 }
   0xb   :  { %p627_p3 = scmp.ne.s32.totalorder %s32_s19, %s626_s27  ;;  %p632_p5 = scmp.lt.s32.totalorder %s626_s27, %s626_s27 }
   0xd   :  { %p633_p6 = por %p632_p5, %p631_p4 }
   0xf   :  { %p634_p7 = pnand %p633_p6, %p627_p3 }
  0x11   :  { %637 = shalt.err (!%p634_p7)
}
  0x12   :  { %s735_s28 = smov 64   ;;  %s736_s29 = smov 4  }
  0x13   :  { %37 = dma.hbm_to_vmem [thread:$0]  %s908_s1, 256, %s32_s19, [#allocation6], %s735_s28, %s735_s28, %s736_s29  }
  0x14   :  { %s737_s7 = smov [#allocation2]   ;;  %s638_s11 = scalar_lea.hbm %s907_s0, 256 }
  0x15   :  { %s19_s8 = sshll.u32 %s737_s7, 4  ;;  %p639_p8 = scmp.ne.s32.totalorder %s907_s0, %s638_s11  ;;  %s20_s8 = int_to_ptr.vmem [resolvable:$true] %s19_s8 }
  0x16   :  { %p642_p9 = scmp.lt.u32.totalorder %s638_s11, %s907_s0 }
  0x18   :  { %p644_p10 = pnand %p642_p9, %p639_p8 }
  0x1a   :  { %647 = shalt.err (!%p644_p10)
}
  0x1b   :  { %s648_s16 = scalar_lea.vmem %s20_s8, 256  ;;  %p653_p12 = scmp.lt.s32.totalorder %s20_s8, %s20_s8 }
  0x1c   :  { %p649_p11 = scmp.ne.s32.totalorder %s20_s8, %s648_s16  ;;  %p654_p13 = scmp.lt.s32.totalorder %s648_s16, %s648_s16 }
  0x1e   :  { %p655_p0 = por %p654_p13, %p653_p12 }
  0x20   :  { %p656_p1 = pnand %p655_p0, %p649_p11 }
  0x22   :  { %659 = shalt.err (!%p656_p1)
}
  0x23   :  { %s738_s1 = smov 128   ;;  %s739_s17 = smov 8  }
  0x24   :  { %25 = dma.hbm_to_vmem [thread:$0]  %s907_s0, 256, %s20_s8, [#allocation3], %s738_s1, %s738_s1, %s739_s17  }
  0x25   :  { %s740_s20 = smov [#allocation7]   ;;  %s741_s22 = smov [#allocation8]  }
  0x26   :  { %s43_s21 = sshll.u32 %s740_s20, 4  ;;  %s55_s23 = sshll.u32 %s741_s22, 4  ;;  %s44_s21 = int_to_ptr.vmem [resolvable:$true] %s43_s21  ;;  %s805_s23 = int_to_ptr.vmem [resolvable:$true] %s55_s23 }
  0x27   :  { %s660_s26 = scalar_lea.hbm %s909_s2, 1024 }
  0x28   :  { %p661_p2 = scmp.ne.s32.totalorder %s909_s2, %s660_s26  ;;  %p664_p3 = scmp.lt.u32.totalorder %s660_s26, %s909_s2 }
  0x2a   :  { %p666_p4 = pnand %p664_p3, %p661_p2 }
  0x2c   :  { %669 = shalt.err (!%p666_p4)
}
  0x2d   :  { %s670_s0 = scalar_lea.vmem %s44_s21, 1024  ;;  %p675_p6 = scmp.lt.s32.totalorder %s44_s21, %s44_s21 }
  0x2e   :  { %p671_p5 = scmp.ne.s32.totalorder %s44_s21, %s670_s0  ;;  %p676_p7 = scmp.lt.s32.totalorder %s670_s0, %s670_s0 }
  0x30   :  { %p677_p8 = por %p676_p7, %p675_p6 }
  0x32   :  { %p678_p9 = pnand %p677_p8, %p671_p5 }
  0x34   :  { %681 = shalt.err (!%p678_p9)
}
  0x35   :  { %49 = dma.hbm_to_vmem [thread:$0]  %s909_s2, 1024, %s44_s21, [#allocation6], %s735_s28, %s735_s28, %s736_s29  }
  0x36   :  { %s682_s12 = scalar_lea.hbm %s910_s3, 1024 }
  0x37   :  { %p683_p10 = scmp.ne.s32.totalorder %s910_s3, %s682_s12  ;;  %p686_p11 = scmp.lt.u32.totalorder %s682_s12, %s910_s3 }
  0x39   :  { %p688_p12 = pnand %p686_p11, %p683_p10 }
  0x3b   :  { %691 = shalt.err (!%p688_p12)
}
  0x3c   :  { %s692_s18 = scalar_lea.vmem %s805_s23, 1024  ;;  %p697_p0 = scmp.lt.s32.totalorder %s805_s23, %s805_s23 }
  0x3d   :  { %p693_p13 = scmp.ne.s32.totalorder %s805_s23, %s692_s18  ;;  %p698_p1 = scmp.lt.s32.totalorder %s692_s18, %s692_s18 }
  0x3f   :  { %p699_p2 = por %p698_p1, %p697_p0 }
  0x41   :  { %p700_p3 = pnand %p699_p2, %p693_p13 }
  0x43   :  { %703 = shalt.err (!%p700_p3)
}
  0x44   :  { %61 = dma.hbm_to_vmem [thread:$0]  %s910_s3, 1024, %s805_s23, [#allocation9], %s735_s28, %s735_s28, %s736_s29  }
  0x45   :  { %726 = dma.done.wait [#allocation3], 256  }
  0x46   :  { %727 = vsyncadd [#allocation3], 4294967040 }
  0x47   :  { %728 = dma.done.wait [#allocation6], 1280  }
  0x48   :  { %729 = vsyncadd [#allocation6], 4294966016 }
  0x49   :  { %730 = dma.done.wait [#allocation9], 1024  }
  0x4a   :  { %731 = vsyncadd [#allocation9], 4294966272  ;;  %v742_v0 = vmov 0.0   ;;  %vm743_vm0 = vmmov 0   ;;  %v582_v1 = vld [vmem:[#allocation5] sm:$0xff]   ;;  %v583_v2 = vld [vmem:[#allocation5 + $0x8] sm:$0xff]   ;;  %v85_v6 = vlaneseq }
  0x4b   :  { %523 = vmatprep.subr.bf16.mxu0 %v742_v0  ;;  %527 = vmatprep.mubr.msk.bf16.mxu0 %vm743_vm0, %v742_v0  ;;  %v78_v3 = vld [vmem:[#allocation2] sm:$0xff]  ;;  %v79_v4 = vld [vmem:[#allocation2 + $0x8] sm:$0xff]  ;;  %vm101_vm1 = vcmask 261120   ;;  %v586_v31 = vld [vmem:[#allocation7 + $0x10] sm:$0xff]  }
  0x4c   :  { %531 = vmatprep.subr.bf16.mxu1 %v742_v0  ;;  %547 = vmatprep.mubr.msk.bf16.mxu1 %vm743_vm0, %v742_v0  ;;  %v80_v5 = vpack.c.bf16 %v79_v4, %v78_v3  ;;  %v849_v7 = vshrl.u32 %v85_v6, 7  ;;  %v855_v9 = vld [vmem:[%s911_s4] sm:$0xff]  ;;  %v585_v30 = vld [vmem:[#allocation7 + $0x8] sm:$0xff]   ;;  %v587_v32 = vld [vmem:[#allocation7 + $0x18] sm:$0xff]   ;;  %s744_s4 = smov [#allocation10]  }
  0x4d   :  { %524 = vmatpush3.bf16.msra.mxu0 %v582_v1  ;;  %v584_v29 = vld [vmem:[#allocation7] sm:$0xff]   ;;  %v589_v34 = vld [vmem:[#allocation7 + $0x28] sm:$0xff]   ;;  %v590_v35 = vld [vmem:[#allocation7 + $0x30] sm:$0xff]   ;;  %s469_s29 = sshll.u32 %s744_s4, 4  ;;  %s470_s29 = int_to_ptr.vmem [resolvable:$true] %s469_s29 }
  0x4e   :  { %525 = vmatprep.subr.bf16.mxu0 %v742_v0  ;;  %v87_v8 = vsub.s32 0, %v849_v7  ;;  %v156_v17 = vsub.s32 7, %v849_v7  ;;  %532 = vmatpush3.bf16.msra.mxu1 %v584_v29  ;;  %v588_v33 = vld [vmem:[#allocation7 + $0x20] sm:$0xff]   ;;  %v591_v36 = vld [vmem:[#allocation7 + $0x38] sm:$0xff]   ;;  %v176_v43 = vsub.s32 1, %v849_v7  ;;  %v182_v44 = vsub.s32 2, %v849_v7  ;;  %p709_p5 = scmp.lt.s32.totalorder %s470_s29, %s470_s29 }
  0x4f   :  { %533 = vmatprep.subr.bf16.mxu1 %v742_v0  ;;  %v215_v3 = vsub.s32 3, %v849_v7  ;;  %v598_v29 = vld [vmem:[#allocation8 + $0x30] sm:$0xff]   ;;  %s704_s20 = scalar_lea.vmem %s470_s29, 256 }
  0x50   :  { %v88_v10 = vrot.slane %v855_v9, %v87_v8  ;;  %v860_v20 = vrot.slane %v855_v9, %v156_v17  ;;  %v177_v45 = vrot.slane %v855_v9, %v176_v43  ;;  %v183_v48 = vrot.slane %v855_v9, %v182_v44  ;;  %p705_p4 = scmp.ne.s32.totalorder %s470_s29, %s704_s20  ;;  %p710_p6 = scmp.lt.s32.totalorder %s704_s20, %s704_s20 }
  0x51   :  { %526 = vmatpush3.bf16.msra.mxu0 %v583_v2  ;;  %v216_v4 = vrot.slane %v855_v9, %v215_v3 }
  0x52   :  { %551 = vmatprep.subr.bf16.mxu0 %v742_v0  ;;  %534 = vmatpush3.bf16.msra.mxu1 %v585_v30  ;;  %v599_v30 = vld [vmem:[#allocation8 + $0x38] sm:$0xff]   ;;  %p711_p7 = por %p710_p6, %p709_p5 }
  0x53   :  { %535 = vmatprep.subr.bf16.mxu1 %v742_v0 }
  0x54   :  { %528 = vmatmul.mubr.msk.bf16.vlgmr.msra.gmra.mrb[0].mxu0 %vm101_vm1, %v80_v5  ;;  %p712_p8 = pnand %p711_p7, %p705_p4 }
  0x55   :  { %567 = vmatprep.mubr.msk.bf16.mxu0 %vm743_vm0, %v742_v0 }
  0x56   :  { %536 = vmatpush3.bf16.msra.mxu1 %v586_v31 }
  0x57   :  { %537 = vmatprep.subr.bf16.mxu1 %v742_v0 }
  0x5a   :  { %538 = vmatpush3.bf16.msra.mxu1 %v587_v32 }
  0x5b   :  { %539 = vmatprep.subr.bf16.mxu1 %v742_v0 }
  0x5e   :  { %540 = vmatpush3.bf16.msra.mxu1 %v588_v33 }
  0x5f   :  { %541 = vmatprep.subr.bf16.mxu1 %v742_v0 }
  0x62   :  { %542 = vmatpush3.bf16.msra.mxu1 %v589_v34 }
  0x63   :  { %543 = vmatprep.subr.bf16.mxu1 %v742_v0 }
  0x66   :  { %544 = vmatpush3.bf16.msra.mxu1 %v590_v35 }
  0x67   :  { %545 = vmatprep.subr.bf16.mxu1 %v742_v0 }
  0x6a   :  { %546 = vmatpush3.bf16.msra.mxu1 %v591_v36 }
 0x127   :  { %v139_v11 = vpop.f32.mrb[0].mxu0 }
 0x128   :  { %v140_v12 = vadd.f32 %v139_v11, %v88_v10  ;;  %v529_v13 = vpop.f32.mrb[1].mxu0 }
 0x129   :  { %v142_v14 = vpop.f32.mrb[2].mxu0 }
 0x12a   :  { %v530_v15 = vpop.f32.mrb[3].mxu0  ;;  %146 = vadd.xlane.f32.xlu0 %v140_v12  ;;  %v143_v16 = vadd.f32 %v142_v14, %v88_v10 }
 0x12e   :  { %148 = vadd.xlane.f32.xlu0 %v143_v16 }
 0x1b7   :  { %v147_v18 = vpop.xlane.xlu0 %146 }
 0x1b8   :  { %v150_v19 = vmul.f32 0.015625, %v147_v18 }
 0x1ba   :  { %v152_v21 = vsub.f32 %v140_v12, %v150_v19 }
 0x1bb   :  { %v149_v22 = vpop.xlane.xlu0 %148 }
 0x1bc   :  { %v151_v23 = vmul.f32 0.015625, %v149_v22  ;;  %v158_v24 = vmul.f32 %v860_v20, %v152_v21 }
 0x1be   :  { %v153_v25 = vsub.f32 %v143_v16, %v151_v23  ;;  %v160_v26 = vmul.f32 %v158_v24, %v158_v24  ;;  %v592_v24 = vld [vmem:[#allocation8] sm:$0xff]  }
 0x1bf   :  { %552 = vmatpush3.bf16.msra.mxu0 %v592_v24 }
 0x1c0   :  { %162 = vadd.xlane.f32.xlu1 %v160_v26  ;;  %v159_v27 = vmul.f32 %v860_v20, %v153_v25  ;;  %553 = vmatprep.subr.bf16.mxu0 %v742_v0  ;;  %v594_v26 = vld [vmem:[#allocation8 + $0x10] sm:$0xff]  }
 0x1c2   :  { %v161_v28 = vmul.f32 %v159_v27, %v159_v27  ;;  %v595_v27 = vld [vmem:[#allocation8 + $0x18] sm:$0xff]  }
 0x1c4   :  { %164 = vadd.xlane.f32.xlu1 %v161_v28  ;;  %v596_v28 = vld [vmem:[#allocation8 + $0x20] sm:$0xff]  }
 0x24d   :  { %v163_v37 = vpop.xlane.xlu1 %162 }
 0x24e   :  { %v166_v38 = vmul.f32 0.015625, %v163_v37  ;;  %v332_v37 = vsub.s32 4, %v849_v7 }
 0x250   :  { %v168_v39 = vadd.f32 1e-05, %v166_v38  ;;  %v338_v38 = vsub.s32 5, %v849_v7 }
 0x251   :  { %v165_v40 = vpop.xlane.xlu1 %164 }
 0x252   :  { %600 = vrsqrt.f32 %v168_v39  ;;  %v167_v41 = vmul.f32 0.015625, %v165_v40  ;;  %v333_v39 = vrot.slane %v855_v9, %v332_v37 }
 0x254   :  { %v169_v42 = vadd.f32 1e-05, %v167_v41 }
 0x256   :  { %602 = vrsqrt.f32 %v169_v42  ;;  %v339_v42 = vrot.slane %v855_v9, %v338_v38 }
 0x25c   :  { %v601_v46 = vpop.eup %600 }
 0x25d   :  { %v172_v47 = vmul.f32 %v601_v46, %v152_v21 }
 0x25f   :  { %v178_v49 = vmul.f32 %v177_v45, %v172_v47 }
 0x260   :  { %v603_v50 = vpop.eup %602 }
 0x261   :  { %v173_v51 = vmul.f32 %v603_v50, %v153_v25  ;;  %v184_v52 = vadd.f32 %v183_v48, %v178_v49  ;;  %v593_v25 = vld [vmem:[#allocation8 + $0x8] sm:$0xff]  }
 0x262   :  { %554 = vmatpush3.bf16.msra.mxu0 %v593_v25 }
 0x263   :  { %v179_v53 = vmul.f32 %v177_v45, %v173_v51  ;;  %v188_v54 = vmul.f32 0.70710677, %v184_v52  ;;  %v186_v60 = vmul.f32 0.5, %v184_v52  ;;  %555 = vmatprep.subr.bf16.mxu0 %v742_v0 }
 0x265   :  { %v185_v55 = vadd.f32 %v183_v48, %v179_v53  ;;  %604 = verf.f32 %v188_v54 }
 0x266   :  { %556 = vmatpush3.bf16.msra.mxu0 %v594_v26 }
 0x267   :  { %v189_v56 = vmul.f32 0.70710677, %v185_v55  ;;  %v187_v61 = vmul.f32 0.5, %v185_v55  ;;  %557 = vmatprep.subr.bf16.mxu0 %v742_v0 }
 0x269   :  { %606 = verf.f32 %v189_v56 }
 0x26a   :  { %558 = vmatpush3.bf16.msra.mxu0 %v595_v27 }
 0x26b   :  { %559 = vmatprep.subr.bf16.mxu0 %v742_v0 }
 0x26e   :  { %560 = vmatpush3.bf16.msra.mxu0 %v596_v28 }
 0x26f   :  { %v605_v57 = vpop.eup %604  ;;  %561 = vmatprep.subr.bf16.mxu0 %v742_v0 }
 0x270   :  { %v192_v58 = vadd.f32 1.0, %v605_v57 }
 0x272   :  { %v194_v63 = vmul.f32 %v192_v58, %v186_v60 }
 0x273   :  { %v607_v59 = vpop.eup %606 }
 0x274   :  { %v193_v62 = vadd.f32 1.0, %v607_v59  ;;  %v371_v59 = vsub.s32 6, %v849_v7 }
 0x276   :  { %v195_v1 = vmul.f32 %v193_v62, %v187_v61  ;;  %v372_v60 = vrot.slane %v855_v9, %v371_v59 }
 0x278   :  { %v196_v2 = vpack.c.bf16 %v195_v1, %v194_v63 }
 0x27a   :  { %548 = vmatmul.mubr.bf16.vlgmr.msra.gmra.mrb[0].mxu1 %v196_v2 }
 0x34d   :  { %v299_v5 = vpop.f32.mrb[0].mxu1 }
 0x34e   :  { %v300_v6 = vadd.f32 %v299_v5, %v216_v4  ;;  %v549_v8 = vpop.f32.mrb[1].mxu1 }
 0x34f   :  { %v302_v10 = vpop.f32.mrb[2].mxu1 }
 0x350   :  { %v303_v11 = vadd.f32 %v302_v10, %v216_v4  ;;  %306 = vadd.xlane.f32.xlu0 %v300_v6  ;;  %v550_v12 = vpop.f32.mrb[3].mxu1 }
 0x352   :  { %308 = vadd.xlane.f32.xlu1 %v303_v11 }
 0x3dd   :  { %v307_v13 = vpop.xlane.xlu0 %306 }
 0x3de   :  { %v310_v14 = vmul.f32 0.015625, %v307_v13 }
 0x3df   :  { %v309_v15 = vpop.xlane.xlu1 %308 }
 0x3e0   :  { %v312_v16 = vsub.f32 %v300_v6, %v310_v14  ;;  %v311_v17 = vmul.f32 0.015625, %v309_v15 }
 0x3e2   :  { %v313_v18 = vsub.f32 %v303_v11, %v311_v17  ;;  %v314_v19 = vmul.f32 %v312_v16, %v860_v20 }
 0x3e4   :  { %v316_v21 = vmul.f32 %v314_v19, %v314_v19  ;;  %v315_v22 = vmul.f32 %v313_v18, %v860_v20  ;;  %v597_v20 = vld [vmem:[#allocation8 + $0x28] sm:$0xff]  }
 0x3e5   :  { %562 = vmatpush3.bf16.msra.mxu0 %v597_v20 }
 0x3e6   :  { %318 = vadd.xlane.f32.xlu0 %v316_v21  ;;  %v317_v23 = vmul.f32 %v315_v22, %v315_v22  ;;  %563 = vmatprep.subr.bf16.mxu0 %v742_v0 }
 0x3e8   :  { %320 = vadd.xlane.f32.xlu1 %v317_v23 }
 0x3e9   :  { %564 = vmatpush3.bf16.msra.mxu0 %v598_v29 }
 0x3ea   :  { %565 = vmatprep.subr.bf16.mxu0 %v742_v0 }
 0x3ed   :  { %566 = vmatpush3.bf16.msra.mxu0 %v599_v30 }
 0x473   :  { %v319_v31 = vpop.xlane.xlu0 %318 }
 0x474   :  { %v322_v32 = vmul.f32 0.015625, %v319_v31 }
 0x475   :  { %v321_v33 = vpop.xlane.xlu1 %320 }
 0x476   :  { %v324_v34 = vadd.f32 1e-05, %v322_v32  ;;  %v323_v35 = vmul.f32 0.015625, %v321_v33 }
 0x478   :  { %608 = vrsqrt.f32 %v324_v34  ;;  %v325_v36 = vadd.f32 1e-05, %v323_v35 }
 0x47a   :  { %610 = vrsqrt.f32 %v325_v36 }
 0x482   :  { %v609_v40 = vpop.eup %608 }
 0x483   :  { %v328_v41 = vmul.f32 %v609_v40, %v312_v16 }
 0x484   :  { %v611_v0 = vpop.eup %610 }
 0x485   :  { %v334_v43 = vmul.f32 %v333_v39, %v328_v41  ;;  %v329_v44 = vmul.f32 %v611_v0, %v313_v18 }
 0x487   :  { %v335_v45 = vmul.f32 %v333_v39, %v329_v44  ;;  %v340_v46 = vadd.f32 %v339_v42, %v334_v43 }
 0x489   :  { %v341_v47 = vadd.f32 %v339_v42, %v335_v45  ;;  %v344_v48 = vmul.f32 0.70710677, %v340_v46  ;;  %v342_v53 = vmul.f32 0.5, %v340_v46 }
 0x48b   :  { %v345_v49 = vmul.f32 0.70710677, %v341_v47  ;;  %612 = verf.f32 %v344_v48  ;;  %v343_v54 = vmul.f32 0.5, %v341_v47 }
 0x48d   :  { %614 = verf.f32 %v345_v49 }
 0x495   :  { %v613_v50 = vpop.eup %612 }
 0x496   :  { %v348_v51 = vadd.f32 1.0, %v613_v50 }
 0x497   :  { %v615_v52 = vpop.eup %614 }
 0x498   :  { %v349_v55 = vadd.f32 1.0, %v615_v52  ;;  %v350_v56 = vmul.f32 %v348_v51, %v342_v53 }
 0x49a   :  { %v351_v57 = vmul.f32 %v349_v55, %v343_v54 }
 0x49c   :  { %v352_v58 = vpack.c.bf16 %v351_v57, %v350_v56 }
 0x49e   :  { %568 = vmatmul.mubr.bf16.vlgmr.msra.gmra.mrb[4].mxu0 %v352_v58 }
 0x571   :  { %v455_v61 = vpop.f32.mrb[4].mxu0 }
 0x572   :  { %v456_v62 = vadd.f32 %v455_v61, %v372_v60  ;;  %v569_v63 = vpop.f32.mrb[5].mxu0 }
 0x573   :  { %v458_v1 = vpop.f32.mrb[6].mxu0 }
 0x574   :  { %462 = vst [vmem:[#allocation10] sm:$0xff] %v456_v62  ;;  %v459_v2 = vadd.f32 %v458_v1, %v372_v60  ;;  %v570_v3 = vpop.f32.mrb[7].mxu0 }
 0x576   :  { %463 = vst [vmem:[#allocation10 + $0x8] sm:$0xff] %v459_v2 }
 0x577   :  { %715 = shalt.err (!%p712_p8)
}
 0x578   :  { %s716_s23 = scalar_lea.hbm %s912_s5, 256 }
 0x579   :  { %p717_p9 = scmp.ne.s32.totalorder %s912_s5, %s716_s23  ;;  %p720_p10 = scmp.lt.u32.totalorder %s716_s23, %s912_s5 }
 0x57b   :  { %p722_p11 = pnand %p720_p10, %p717_p9 }
 0x57d   :  { %725 = shalt.err (!%p722_p11)
}
 0x57e   :  { %475 = dma.vmem_to_hbm [thread:$0]  %s470_s29, 256, %s912_s5, [#allocation4], %s738_s1, %s738_s1, %s739_s17  }
 0x57f   :  { %732 = dma.done.wait [#allocation4], 256  }
 0x580   :  { %733 = vsyncadd [#allocation4], 4294967040 }
 0x581   :  { %479 = vsyncpa [#allocation3], 1 }
 0x582   :  { %480 = vsyncpa [#allocation6], 1 }
 0x583   :  { %481 = vsyncpa [#allocation9], 1 }
 0x584   :  { %482 = vsyncpa [#allocation4], 1 }

</bundles_post_ra>
